<compile_context>
chip_gen: v5e
topology: v5e:2x2
jax: 0.10.0
libtpu: 0.0.40
codegen_flags: <defaults>
</compile_context>

<pallas_src>
import jax
import jax.numpy as jnp
import numpy as np
from jax.experimental import pallas as pl
from jax.experimental.pallas import tpu as pltpu

NUM_POINTS = 8
NUM_SCALAR_FEATS = 8            # 8x0e radial-basis scalars
RBF_SIGMA = 0.5
INV_TWO_SIGMA2 = 1.0 / (2.0 * RBF_SIGMA ** 2)
EPS = 1e-9
PAD_OUT = 8                     # fused weight padded 6 -> 8 output rows (zeros)
B_TILE = 1024                   # default batch tile (multiple of 256)


# ----------------------------------------------------------------------------
# Parameter packing.
#   packed_single : [16, 8]  row 0 = centers (lanes), rows 8..15 = W_fused [8in,8out]
#   centers_vec   : [8]      RBF centers (SMEM scalars for the batched kernel)
#   w_t           : [8, 8]   W_fused^T  (rows = padded outputs, cols = 8 RBF feats)
# where W_fused = (w1s @ w2s) / NUM_POINTS  (linear1∘linear2 on 0e, mean folded in).
# ----------------------------------------------------------------------------
def pack_params(centers, w1s, w2s):
    w_fused = jnp.dot(w1s, w2s, preferred_element_type=jnp.float32) / float(NUM_POINTS)
    w_pad = jnp.zeros((NUM_SCALAR_FEATS, PAD_OUT), jnp.float32)
    w_pad = w_pad.at[:, : w_fused.shape[1]].set(w_fused)              # [8in, 8out]

    packed_single = jnp.zeros((2 * NUM_SCALAR_FEATS, NUM_SCALAR_FEATS), jnp.float32)
    packed_single = packed_single.at[0, :].set(centers.reshape(-1))
    packed_single = packed_single.at[NUM_SCALAR_FEATS:, :].set(w_pad)

    centers_vec = centers.reshape(-1).astype(jnp.float32)              # [8]
    w_t = w_pad.T                                                      # [8out, 8in]
    return packed_single, centers_vec, w_t


# ----------------------------------------------------------------------------
# Single point cloud kernel: positions [N, 3] -> [1, 8] (first 6 lanes valid).
# This path is launch/DMA-latency bound; kept minimal on purpose.
# ----------------------------------------------------------------------------
def simple_model2_kernel(pos_ref, packed_ref, out_ref):
    pos = pos_ref[...]                                          # [N, 3]
    pos = pos - jnp.mean(pos, axis=0, keepdims=True)            # center
    r = jnp.sqrt(jnp.sum(pos * pos, axis=-1, keepdims=True))    # [N, 1]
    centers = packed_ref[0:1, :]                                # [1, 8]
    rbf = jnp.exp(-((r - centers) ** 2) * INV_TWO_SIGMA2)       # [N, 8]  8x0e
    s = jnp.sum(rbf, axis=0, keepdims=True)                     # [1, 8]  (1/N folded in W)
    w = packed_ref[NUM_SCALAR_FEATS:, :]                        # [8, 8]  fused linear1∘linear2
    out_ref[...] = jnp.dot(s, w, preferred_element_type=jnp.float32)   # [1, 8]


def simple_model2_forward(positions, packed_single):
    out = pl.pallas_call(
        simple_model2_kernel,
        out_shape=jax.ShapeDtypeStruct((1, PAD_OUT), jnp.float32),
        in_specs=[pl.BlockSpec(memory_space=pltpu.MemorySpace.VMEM)] * 2,
        out_specs=pl.BlockSpec(memory_space=pltpu.MemorySpace.VMEM),
    )(positions, packed_single)
    # torch.cat of the 6 output scalars -> shape [6]
    return out[0, :6]


# ----------------------------------------------------------------------------
# Batched throughput variant (batch on lanes):
#   input  block [3, N, Bt]   (wrapper re-layouts [B,N,3] -> [3,N,B])
#   output block [8, Bt]      lane-dense, written by W^T @ s (no transpose)
# ----------------------------------------------------------------------------
def simple_model2_batched_kernel(pos_ref, centers_ref, w_t_ref, out_ref):
    pos = pos_ref[...]                                          # [3, N, Bt]
    pos = pos - jnp.mean(pos, axis=1, keepdims=True)            # center each cloud
    r = jnp.sqrt(jnp.sum(pos * pos, axis=0))                    # [N, Bt]
    rows = []
    for c in range(NUM_SCALAR_FEATS):                           # static unroll (8)
        cen = centers_ref[c]                                    # SMEM scalar splat
        rbf_c = jnp.exp(-((r - cen) ** 2) * INV_TWO_SIGMA2)     # [N, Bt]
        rows.append(jnp.sum(rbf_c, axis=0, keepdims=True))      # [1, Bt]  (1/N in W)
    s = jnp.concatenate(rows, axis=0)                           # [8, Bt]
    # [8out, 8feat] @ [8feat, Bt] -> [8, Bt], Bt on the MXU N dimension.
    out_ref[...] = jnp.dot(w_t_ref[...], s, preferred_element_type=jnp.float32)


def simple_model2_forward_batched(positions_b, centers_vec, w_t,
                                  b_tile=B_TILE, lane_dense_output=True):
    """positions_b: [B, N, 3].  Returns the lane-dense [8, B] slab (rows 0..5
    valid) by default, or [B, 6] if lane_dense_output=False."""
    B, N, _ = positions_b.shape
    n_tiles = -(-B // b_tile)                                    # ceil div
    Bp = n_tiles * b_tile
    if Bp != B:                                                  # pad ragged batch
        pad = jnp.zeros((Bp - B, N, 3), positions_b.dtype)
        positions_b = jnp.concatenate([positions_b, pad], axis=0)
    pos_t = jnp.transpose(positions_b, (2, 1, 0))                # [3, N, Bp]

    out = pl.pallas_call(
        simple_model2_batched_kernel,
        out_shape=jax.ShapeDtypeStruct((PAD_OUT, Bp), jnp.float32),
        grid_spec=pltpu.PrefetchScalarGridSpec(
            num_scalar_prefetch=0,
            grid=(n_tiles,),
            in_specs=[
                pl.BlockSpec((3, N, b_tile), lambda b: (0, 0, b)),
                pl.BlockSpec(memory_space=pltpu.MemorySpace.SMEM),   # centers [8]
                pl.BlockSpec(memory_space=pltpu.MemorySpace.VMEM),   # W^T [8,8]
            ],
            out_specs=pl.BlockSpec((PAD_OUT, b_tile), lambda b: (0, b)),
        ),
        compiler_params=pltpu.CompilerParams(dimension_semantics=("parallel",)),
    )(pos_t, centers_vec, w_t)

    if lane_dense_output:
        return out[:, :B]                                        # [8, B] slab
    return out[:6, :B].T                                         # [B, 6]


# ----------------------------------------------------------------------------
# Pure-JAX reference: the ORIGINAL (un-fused) math, including the dead SH path.
# ----------------------------------------------------------------------------
def reference_forward(positions, centers, w1s, w1v, w2s):
    pos = positions - jnp.mean(positions, axis=0, keepdims=True)
    r = jnp.sqrt(jnp.sum(pos * pos, axis=-1, keepdims=True))                # [N, 1]
    d = pos / (r + EPS)                                                     # [N, 3]
    x, y, z = d[:, 0:1], d[:, 1:2], d[:, 2:3]

    rbf = jnp.exp(-((r - centers) ** 2) * INV_TWO_SIGMA2)                   # [N, 8] 8x0e
    sh1 = jnp.concatenate([y, z, x], axis=-1)                               # [N, 3] 1x1o
    s3 = jnp.sqrt(3.0)
    sh2 = jnp.concatenate(                                                   # [N, 5] 1x2e
        [s3 * x * y, s3 * y * z, 0.5 * (2.0 * z * z - x * x - y * y),
         s3 * x * z, 0.5 * s3 * (x * x - y * y)], axis=-1)

    s0 = jnp.mean(rbf, axis=0, keepdims=True)                               # [1, 8]
    v1 = jnp.mean(sh1, axis=0, keepdims=True)                               # [1, 3]
    _t2 = jnp.mean(sh2, axis=0, keepdims=True)                              # 2e: no linear1 output slot

    s = jnp.dot(s0, w1s)                                                    # linear1 0e -> 6x0e
    _v = w1v * v1                                                           # linear1 1o -> 4x1o (dropped by linear2)
    s = jnp.dot(s, w2s)                                                     # linear2 0e -> 6x0e
    return s.reshape(6)


if __name__ == "__main__":
    key = jax.random.PRNGKey(0)
    kpos, kw1, kw1v, kw2, kmlp, kbatch, krag = jax.random.split(key, 7)

    positions = jax.random.normal(kpos, (NUM_POINTS, 3), dtype=jnp.float32)

    # Deterministic synthetic parameters (shapes implied by the irreps strings).
    centers = jnp.linspace(0.0, 2.5, NUM_SCALAR_FEATS,
                           dtype=jnp.float32).reshape(1, NUM_SCALAR_FEATS)
    w1s = jax.random.normal(kw1, (8, 6), dtype=jnp.float32) / jnp.sqrt(8.0)   # linear1: 8x0e -> 6x0e
    w1v = jax.random.normal(kw1v, (4, 1), dtype=jnp.float32)                  # linear1: 1x1o -> 4x1o (never reaches 0e output)
    w2s = jax.random.normal(kw2, (6, 6), dtype=jnp.float32) / jnp.sqrt(6.0)   # linear2: 6x0e -> 6x0e

    # output_mlp = nn.Linear(6, num_classes) exists in __init__ but is NOT used
    # in forward(); initialized only for parameter parity.
    num_classes = 4
    _mlp_w = jax.random.normal(kmlp, (num_classes, 6), dtype=jnp.float32) / jnp.sqrt(6.0)
    _mlp_b = jnp.zeros((num_classes,), dtype=jnp.float32)

    packed_single, centers_vec, w_t = pack_params(centers, w1s, w2s)

    # --- single point cloud (exact module semantics) ---
    out = jax.block_until_ready(simple_model2_forward(positions, packed_single))
    ref = reference_forward(positions, centers, w1s, w1v, w2s)
    np.testing.assert_allclose(np.asarray(out), np.asarray(ref), rtol=1e-5, atol=1e-5)

    # --- batched throughput path (batch on lanes, parallel grid axis) ---
    B = 512
    positions_b = jax.random.normal(kbatch, (B, NUM_POINTS, 3), dtype=jnp.float32)
    out_slab = jax.block_until_ready(
        simple_model2_forward_batched(positions_b, centers_vec, w_t, b_tile=256))  # [8, B]
    ref_b = jax.vmap(lambda p: reference_forward(p, centers, w1s, w1v, w2s))(positions_b)
    np.testing.assert_allclose(np.asarray(out_slab[:6, :].T), np.asarray(ref_b),
                               rtol=1e-5, atol=1e-5)

    # --- ragged batch (padded to a multiple of b_tile inside the wrapper) ---
    Br = 67
    positions_r = jax.random.normal(krag, (Br, NUM_POINTS, 3), dtype=jnp.float32)
    out_r = jax.block_until_ready(
        simple_model2_forward_batched(positions_r, centers_vec, w_t,
                                      b_tile=256, lane_dense_output=False))  # [Br, 6]
    ref_r = jax.vmap(lambda p: reference_forward(p, centers, w1s, w1v, w2s))(positions_r)
    np.testing.assert_allclose(np.asarray(out_r), np.asarray(ref_r), rtol=1e-5, atol=1e-5)

    print("KERNEL_OK")
</pallas_src>

<mosaic_0001>
module attributes {stable_mosaic.version = 11 : i64} {
  func.func @simple_model2_kernel(%arg0: memref<8x3xf32, #tpu.memory_space<vmem>>, %arg1: memref<16x8xf32, #tpu.memory_space<vmem>>, %arg2: memref<1x8xf32, #tpu.memory_space<vmem>>) attributes {dimension_semantics = [], scalar_prefetch = 0 : i64, scratch_operands = 0 : i64, tpu.core_type = #tpu.core_type<tc>} {
    %c0 = arith.constant 0 : index
    %c0_0 = arith.constant 0 : index
    %0 = vector.load %arg0[%c0, %c0_0] : memref<8x3xf32, #tpu.memory_space<vmem>>, vector<8x3xf32>
    %cst = arith.constant dense<0.000000e+00> : vector<3xf32>
    %1 = vector.multi_reduction <add>, %0, %cst [0] : vector<8x3xf32> to vector<3xf32>
    %2 = vector.shape_cast %1 : vector<3xf32> to vector<1x3xf32>
    %cst_1 = arith.constant 8.000000e+00 : f32
    %3 = vector.broadcast %cst_1 : f32 to vector<1x3xf32>
    %4 = arith.divf %2, %3 : vector<1x3xf32>
    %5 = vector.broadcast %4 : vector<1x3xf32> to vector<8x3xf32>
    %6 = arith.subf %0, %5 : vector<8x3xf32>
    %7 = arith.mulf %6, %6 : vector<8x3xf32>
    %cst_2 = arith.constant dense<0.000000e+00> : vector<8xf32>
    %8 = vector.multi_reduction <add>, %7, %cst_2 [1] : vector<8x3xf32> to vector<8xf32>
    %9 = vector.shape_cast %8 : vector<8xf32> to vector<8x1xf32>
    %10 = math.sqrt %9 : vector<8x1xf32>
    %c0_3 = arith.constant 0 : index
    %c0_4 = arith.constant 0 : index
    %11 = vector.load %arg1[%c0_3, %c0_4] : memref<16x8xf32, #tpu.memory_space<vmem>>, vector<1x8xf32>
    %12 = vector.broadcast %10 : vector<8x1xf32> to vector<8x8xf32>
    %13 = vector.broadcast %11 : vector<1x8xf32> to vector<8x8xf32>
    %14 = arith.subf %12, %13 : vector<8x8xf32>
    %15 = arith.mulf %14, %14 : vector<8x8xf32>
    %cst_5 = arith.constant 0.000000e+00 : f32
    %16 = vector.broadcast %cst_5 : f32 to vector<8x8xf32>
    %17 = arith.subf %16, %15 : vector<8x8xf32>
    %cst_6 = arith.constant 2.000000e+00 : f32
    %18 = vector.broadcast %cst_6 : f32 to vector<8x8xf32>
    %19 = arith.mulf %17, %18 : vector<8x8xf32>
    %20 = math.exp %19 : vector<8x8xf32>
    %cst_7 = arith.constant dense<0.000000e+00> : vector<8xf32>
    %21 = vector.multi_reduction <add>, %20, %cst_7 [0] : vector<8x8xf32> to vector<8xf32>
    %22 = vector.shape_cast %21 : vector<8xf32> to vector<1x8xf32>
    %c8 = arith.constant 8 : index
    %c0_8 = arith.constant 0 : index
    %23 = vector.load %arg1[%c8, %c0_8] : memref<16x8xf32, #tpu.memory_space<vmem>>, vector<8x8xf32>
    %cst_9 = arith.constant dense<0.000000e+00> : vector<1x8xf32>
    %24 = tpu.matmul %22, %23, %cst_9 {dimension_numbers = #tpu.dot_dimension_numbers<[1], [0], [0], [1], [0, 0, 1, 1], [], []>} : vector<1x8xf32>, vector<8x8xf32>, vector<1x8xf32> -> vector<1x8xf32>
    %c0_10 = arith.constant 0 : index
    %c0_11 = arith.constant 0 : index
    %25 = vector.load %arg2[%c0_10, %c0_11] : memref<1x8xf32, #tpu.memory_space<vmem>>, vector<1x8xf32>
    tpu.vector_store %arg2[%c0_10, %c0_11], %24 {strides = array<i32>} : memref<1x8xf32, #tpu.memory_space<vmem>>, vector<1x8xf32>,
    return
  }
}

</mosaic_0001>

<bundles_post_ra>
// kernel: tpu_custom_call.1
= control target key start
LH: loop header
LB: loop body
LE: loop exit
PB: predicated region body
PF: predicated region fallthrough
CT: control target
= control target key end

     0   :  { %vm13_vm0 = vcmask 23552   ;;  %v140_v2 = vmov 8.0   ;;  %s171_s0 = inlined_call_operand.vmem [shape: f32[8,3], index: 0, kind: input, shape index: {}]   ;;  %s172_s1 = inlined_call_operand.vmem [shape: f32[16,8], index: 1, kind: input, shape index: {}]   ;;  %s173_s2 = inlined_call_operand.hbm [shape: f32[1,8], index: 2, kind: output, shape index: {}]  }
   0x1   :  { %v12_v0 = vld [vmem:[%s171_s0] sm:$0xff]  ;;  %108 = vrcp.f32 %v140_v2 }
   0x2   :  { %v14_v1 = vsel %vm13_vm0, %v12_v0, 0.0 }
   0x3   :  { %7 = vsyncpa [#allocation3], 0  ;;  %v15_v3 = vrot.slane %v14_v1, 4  ;;  %v62_v19 = vld [vmem:[%s172_s1 + $0x8] sm:$0xff]  ;;  %v107_v28 = vld [vmem:[%s172_s1] ss:$0 sm:$0xff] }
   0x4   :  { %81 = vmatpush.msra.mxu0 %v62_v19  ;;  %vm54_vm4 = vcmask 64512   ;;  %s141_s1 = smov [#allocation2]   ;;  %s95_s17 = sshll.u32 %s173_s2, 4  ;;  %vm86_vm5 = vcmask 57344   ;;  %s96_s17 = int_to_ptr.hbm [resolvable:$true] %s95_s17 }
   0x5   :  { %v16_v4 = vadd.f32 %v15_v3, %v14_v1  ;;  %s93_s14 = sshll.u32 %s141_s1, 4  ;;  %s94_s14 = int_to_ptr.vmem [resolvable:$true] %s93_s14 }
   0x7   :  { %v17_v5 = vrot.slane %v16_v4, 2  ;;  %v109_v6 = vpop.eup %108 }
   0x8   :  { %v22_v8 = vmul.f32 8.0, %v109_v6  ;;  %vm26_vm1 = vweird.f32 %v109_v6 }
   0x9   :  { %v18_v7 = vadd.f32 %v17_v5, %v16_v4 }
   0xa   :  { %v23_v10 = vsub.f32 1.0, %v22_v8 }
   0xb   :  { %v19_v9 = vrot.slane %v18_v7, 1 }
   0xc   :  { %v24_v11 = vmul.f32 %v109_v6, %v23_v10 }
   0xd   :  { %v20_v12 = vadd.f32 %v19_v9, %v18_v7 }
   0xe   :  { %v25_v13 = vadd.f32 %v109_v6, %v24_v11 }
  0x10   :  { %v27_v14 = vsel %vm26_vm1, %v109_v6, %v25_v13 }
  0x11   :  { %v28_v15 = vmul.f32 %v27_v14, %v20_v12 }
  0x13   :  { %v29_v16 = vsub.f32 %v12_v0, %v28_v15 }
  0x15   :  { %v30_v17 = vmul.f32 %v29_v16, %v29_v16 }
  0x17   :  { %v31_v18 = vsel %vm13_vm0, %v30_v17, 0.0 }
  0x18   :  { %32 = vadd.xlane.f32.xlu0 %v31_v18 }
  0x8b   :  { %v33_v20 = vpop.xlane.xlu0 %32 }
  0x8c   :  { %110 = vrsqrt.f32 %v33_v20  ;;  %vm41_vm2 = vcmp.eq.f32.partialorder %v33_v20, inf  ;;  %v44_v29 = vand.u32 2147483648, %v33_v20  ;;  %vm43_vm3 = vcmp.eq.f32.partialorder %v33_v20, 0.0 }
  0x92   :  { %v111_v21 = vpop.eup %110 }
  0x93   :  { %v35_v22 = vmul.f32 %v111_v21, %v33_v20 }
  0x95   :  { %v36_v23 = vmul.f32 %v111_v21, %v35_v22 }
  0x97   :  { %v37_v24 = vmul.f32 0.5, %v36_v23 }
  0x99   :  { %v38_v25 = vsub.f32 1.5, %v37_v24 }
  0x9b   :  { %v39_v26 = vmul.f32 %v111_v21, %v38_v25 }
  0x9d   :  { %v40_v27 = vmul.f32 %v39_v26, %v33_v20 }
  0x9f   :  { %v42_v30 = vsel %vm41_vm2, %v33_v20, %v40_v27 }
  0xa0   :  { %v45_v31 = vsel %vm43_vm3, %v44_v29, %v42_v30 }
  0xa1   :  { %v48_v32 = vsub.f32 %v45_v31, %v107_v28 }
  0xa3   :  { %v49_v33 = vmul.f32 %v48_v32, %v48_v32 }
  0xa5   :  { %v50_v34 = vsub.f32 0.0, %v49_v33 }
  0xa7   :  { %v51_v35 = vmul.f32 2.0, %v50_v34 }
  0xa9   :  { %v52_v36 = vmul.f32 1.442695, %v51_v35 }
  0xab   :  { %112 = vpow2.f32 %v52_v36 }
  0xb1   :  { %v113_v37 = vpop.eup %112 }
  0xb2   :  { %v55_v38 = vsel %vm54_vm4, %v113_v37, 0.0 }
  0xb3   :  { %v56_v39 = vrot.slane %v55_v38, 4 }
  0xb5   :  { %v57_v40 = vadd.f32 %v56_v39, %v55_v38 }
  0xb7   :  { %v58_v41 = vrot.slane %v57_v40, 2 }
  0xb9   :  { %v59_v42 = vadd.f32 %v58_v41, %v57_v40 }
  0xbb   :  { %v60_v43 = vrot.slane %v59_v42, 1 }
  0xbd   :  { %v61_v44 = vadd.f32 %v60_v43, %v59_v42 }
  0xbf   :  { %104 = vmatmul.msk.f32.vlgmr.msra.gmra.mxu0 %vm54_vm4, %v61_v44 }
 0x13c   :  { %v83_v45 = vpop.f32.mrf.mxu0 }
 0x13d   :  { %87 = vst.msk [vmem:[#allocation2] sm:$0x1] %vm86_vm5, %v83_v45 }
 0x13e   :  { %98 = dma.vmem_to_hbm [thread:$0]  %s94_s14, 16, %s96_s17, [#allocation3]  }
 0x13f   :  { %138 = dma.done.wait [#allocation3], 16  }
 0x140   :  { %139 = vsyncadd [#allocation3], 4294967280 }
 0x141   :  { %103 = vsyncpa [#allocation3], 1 }

</bundles_post_ra>
